<compile_context>
chip_gen: v7x
topology: tpu7x:2x2x1
jax: 0.10.0
libtpu: 0.0.40
codegen_flags: <defaults>
</compile_context>

<pallas_src>
import functools
import math

import jax
import jax.numpy as jnp
from jax import lax
from jax.experimental import pallas as pl
from jax.experimental.pallas import tpu as pltpu

_EPS = 1e-8  # F.cosine_similarity eps


def _round_up(x, m):
    return ((x + m - 1) // m) * m


def _l2_normalize(x):
    # TODO(synk): F.cosine_similarity clamps ||a||*||b|| at eps; this clamps each
    # row norm separately (differs only for near-zero-norm rows).
    n2 = jnp.sum(x * x, axis=1, keepdims=True)
    return x * lax.rsqrt(jnp.maximum(n2, _EPS * _EPS))


def _pinn_gram_tile_kernel(rows_ref, cols_ref, lhs_ref, rhs_ref, out_ref):
    # rows_ref / cols_ref are the scalar-prefetched pair tables; they are only
    # consumed by the index_maps (diag/off-diag weighting happens in the wrapper).
    del rows_ref, cols_ref
    # Contract the feature (2D) axis of both operands on the MXU; no explicit .T
    # (checked with pl.lower_as_mlir that this lowers without an XLU transpose).
    diff = lax.dot_general(
        lhs_ref[...], rhs_ref[...],
        (((1,), (1,)), ((), ())),
        preferred_element_type=jnp.float32)            # [TILE, TILE] f32 = cos_f - cos_t
    d2 = diff * diff
    tm, tn = d2.shape
    # Fold to a lane-dense (8, TILE) partial: reshape splits only the leading
    # (sublane) axis -> pure VPU vreg adds, no cross-lane XLU reduce, unmasked stores.
    out_ref[0] = jnp.sum(d2.reshape(tm // 8, 8, tn), axis=0)


def pinn_loss(feat, target, *, manifold_reg=0.01, gradient_reg=0.01,
              loss_weight=1.0, tile_rows=512, matmul_dtype=jnp.bfloat16,
              vmem_limit_bytes=32 * 1024 * 1024):
    """Pallas implementation of PINNLoss.forward (h_norm2 / m_norm2 = None)."""
    n, d_feat = feat.shape
    assert target.shape == (n, d_feat)
    feat = feat.astype(jnp.float32)
    target = target.astype(jnp.float32)

    # ---- O(N*D) terms in plain JAX (hoisted out of the kernel) --------------
    dot = jnp.sum(feat * target, axis=1)
    base_loss = 0.5 * jnp.mean((dot - 1.0) ** 2)
    manifold_loss = n * math.sqrt(d_feat)  # analytic: grad(feat.sum(), feat) == ones

    # ---- fused, pre-normalized, bf16 operands for the gram kernel -----------
    fhat = _l2_normalize(feat)
    that = _l2_normalize(target)
    lhs = jnp.concatenate([fhat, that], axis=1).astype(matmul_dtype)    # (N, 2D)
    rhs = jnp.concatenate([fhat, -that], axis=1).astype(matmul_dtype)   # (N, 2D)

    # ---- tiling: pad N to a multiple of the tile (zero rows contribute 0) ---
    assert tile_rows % 128 == 0, "tile_rows must be a multiple of 128"
    tile = min(tile_rows, _round_up(n, 128))
    n_pad = _round_up(n, tile)
    if n_pad != n:
        pad_cfg = ((0, n_pad - n), (0, 0))
        lhs = jnp.pad(lhs, pad_cfg)
        rhs = jnp.pad(rhs, pad_cfg)
    num_t = n_pad // tile

    # Upper-triangular tile-pair table (scalar prefetch) + symmetry weights.
    pairs = [(i, j) for i in range(num_t) for j in range(i, num_t)]
    rows = jnp.asarray([p[0] for p in pairs], dtype=jnp.int32)
    cols = jnp.asarray([p[1] for p in pairs], dtype=jnp.int32)
    weights = jnp.asarray([1.0 if i == j else 2.0 for (i, j) in pairs],
                          dtype=jnp.float32)
    num_pairs = len(pairs)

    two_d = lhs.shape[1]
    itemsize = jnp.dtype(matmul_dtype).itemsize
    cost = pl.CostEstimate(
        flops=int(num_pairs * (2 * tile * tile * two_d + 2 * tile * tile)),
        transcendentals=0,
        bytes_accessed=int(num_pairs * (2 * tile * two_d * itemsize
                                        + 8 * tile * 4)),
    )

    partials = pl.pallas_call(
        _pinn_gram_tile_kernel,
        out_shape=jax.ShapeDtypeStruct((num_pairs, 8, tile), jnp.float32),
        grid_spec=pltpu.PrefetchScalarGridSpec(
            num_scalar_prefetch=2,
            grid=(num_pairs,),
            in_specs=[
                pl.BlockSpec((tile, two_d), lambda p, r, c: (r[p], 0)),  # i-tile
                pl.BlockSpec((tile, two_d), lambda p, r, c: (c[p], 0)),  # j-tile
            ],
            out_specs=pl.BlockSpec((1, 8, tile), lambda p, r, c: (p, 0, 0)),
        ),
        compiler_params=pltpu.CompilerParams(
            dimension_semantics=("parallel",),
            vmem_limit_bytes=vmem_limit_bytes),
        cost_estimate=cost,
    )(rows, cols, lhs, rhs)

    # Weighted sum of per-pair partials (off-diagonal tiles count twice), then
    # scale once at the end (avoids tiny per-step scaled accumulation).
    gradient_loss = jnp.sum(partials * weights[:, None, None]) / (n * n)

    total = (base_loss
             + manifold_reg * manifold_loss
             + gradient_reg * gradient_loss)
    return total * loss_weight


def pinn_loss_ref(feat, target, *, manifold_reg=0.01, gradient_reg=0.01,
                  loss_weight=1.0):
    """Pure-JAX reference mirroring the PyTorch forward (None norms path)."""
    n, d_feat = feat.shape
    dot = jnp.sum(feat * target, axis=1)
    base_loss = 0.5 * jnp.mean((dot - 1.0) ** 2)
    manifold_loss = n * math.sqrt(d_feat)
    fhat = _l2_normalize(feat)
    that = _l2_normalize(target)
    cos_f = fhat @ fhat.T
    cos_t = that @ that.T
    gradient_loss = jnp.mean((cos_f - cos_t) ** 2)
    total = base_loss + manifold_reg * manifold_loss + gradient_reg * gradient_loss
    return total * loss_weight


if __name__ == "__main__":
    key = jax.random.PRNGKey(0)
    k0, k1, k2, k3 = jax.random.split(key, 4)

    # Small case: batch of 8 feature vectors, hidden dim 32 (rows zero-padded to
    # one 128-row tile, single-pair grid).
    feat_s = jax.random.normal(k0, (8, 32), dtype=jnp.float32)
    tgt_s = jax.random.normal(k1, (8, 32), dtype=jnp.float32)
    loss_s = jax.block_until_ready(jax.jit(pinn_loss)(feat_s, tgt_s))
    ref_s = jax.block_until_ready(pinn_loss_ref(feat_s, tgt_s))
    assert jnp.allclose(loss_s, ref_s, rtol=1e-3, atol=1e-3), (loss_s, ref_s)

    # Odd N, multi-tile case: exercises zero-padding (300 -> 384 rows) and the
    # upper-triangular pair grid (3 row tiles -> 6 weighted pairs).
    feat_l = jax.random.normal(k2, (300, 64), dtype=jnp.float32)
    tgt_l = jax.random.normal(k3, (300, 64), dtype=jnp.float32)
    loss_fn = jax.jit(functools.partial(pinn_loss, tile_rows=128))
    loss_l = jax.block_until_ready(loss_fn(feat_l, tgt_l))
    ref_l = jax.block_until_ready(pinn_loss_ref(feat_l, tgt_l))
    assert jnp.allclose(loss_l, ref_l, rtol=1e-3, atol=1e-3), (loss_l, ref_l)

    print("KERNEL_OK")
</pallas_src>

<mosaic_0001>
module attributes {stable_mosaic.version = 11 : i64} {
  func.func @_pinn_gram_tile_kernel(%arg0: i32, %arg1: memref<1xi32, #tpu.memory_space<smem>>, %arg2: memref<1xi32, #tpu.memory_space<smem>>, %arg3: memref<128x64xbf16, #tpu.memory_space<vmem>>, %arg4: memref<128x64xbf16, #tpu.memory_space<vmem>>, %arg5: memref<1x8x128xf32, #tpu.memory_space<vmem>>) attributes {dimension_semantics = [#tpu.dimension_semantics<parallel>], iteration_bounds = array<i64: 1>, scalar_prefetch = 2 : i64, scratch_operands = 0 : i64, tpu.core_type = #tpu.core_type<tc>, window_params = [{transform_indices = @transform_0, window_bounds = array<i64: 128, 64>}, {transform_indices = @transform_1, window_bounds = array<i64: 128, 64>}, {transform_indices = @transform_2, window_bounds = array<i64: 1, 8, 128>}]} {
    %c0 = arith.constant 0 : index
    %c0_0 = arith.constant 0 : index
    %0 = vector.load %arg3[%c0, %c0_0] : memref<128x64xbf16, #tpu.memory_space<vmem>>, vector<128x64xbf16>
    %c0_1 = arith.constant 0 : index
    %c0_2 = arith.constant 0 : index
    %1 = vector.load %arg4[%c0_1, %c0_2] : memref<128x64xbf16, #tpu.memory_space<vmem>>, vector<128x64xbf16>
    %cst = arith.constant dense<0.000000e+00> : vector<128x128xf32>
    %2 = tpu.matmul %0, %1, %cst {dimension_numbers = #tpu.dot_dimension_numbers<[1], [1], [0], [0], [0, 0, 1, 0], [], []>} : vector<128x64xbf16>, vector<128x64xbf16>, vector<128x128xf32> -> vector<128x128xf32>
    %3 = arith.mulf %2, %2 : vector<128x128xf32>
    %4 = vector.shape_cast %3 : vector<128x128xf32> to vector<16x8x128xf32>
    %cst_3 = arith.constant dense<0.000000e+00> : vector<8x128xf32>
    %5 = vector.multi_reduction <add>, %4, %cst_3 [0] : vector<16x8x128xf32> to vector<8x128xf32>
    %c0_4 = arith.constant 0 : index
    %c0_5 = arith.constant 0 : index
    %c0_6 = arith.constant 0 : index
    %6 = vector.load %arg5[%c0_4, %c0_5, %c0_6] : memref<1x8x128xf32, #tpu.memory_space<vmem>>, vector<1x8x128xf32>
    %7 = vector.shape_cast %6 : vector<1x8x128xf32> to vector<8x128xf32>
    %8 = vector.shape_cast %5 : vector<8x128xf32> to vector<1x8x128xf32>
    tpu.vector_store %arg5[%c0_4, %c0_5, %c0_6], %8 {strides = array<i32>} : memref<1x8x128xf32, #tpu.memory_space<vmem>>, vector<1x8x128xf32>,
    return
  }
  func.func @transform_0(%arg0: i32, %arg1: memref<1xi32, #tpu.memory_space<smem>>, %arg2: memref<1xi32, #tpu.memory_space<smem>>) -> (i32, i32) {
    %0 = arith.index_cast %arg0 : i32 to index
    %1 = memref.load %arg1[%0] : memref<1xi32, #tpu.memory_space<smem>>
    %c0_i32 = arith.constant 0 : i32
    %c0_i32_0 = arith.constant 0 : i32
    return %1, %c0_i32 : i32, i32
  }
  func.func @transform_1(%arg0: i32, %arg1: memref<1xi32, #tpu.memory_space<smem>>, %arg2: memref<1xi32, #tpu.memory_space<smem>>) -> (i32, i32) {
    %0 = arith.index_cast %arg0 : i32 to index
    %1 = memref.load %arg2[%0] : memref<1xi32, #tpu.memory_space<smem>>
    %c0_i32 = arith.constant 0 : i32
    %c0_i32_0 = arith.constant 0 : i32
    return %1, %c0_i32 : i32, i32
  }
  func.func @transform_2(%arg0: i32, %arg1: memref<1xi32, #tpu.memory_space<smem>>, %arg2: memref<1xi32, #tpu.memory_space<smem>>) -> (i32, i32, i32) {
    %c0_i32 = arith.constant 0 : i32
    %c0_i32_0 = arith.constant 0 : i32
    %c0_i32_1 = arith.constant 0 : i32
    return %arg0, %c0_i32, %c0_i32_0 : i32, i32, i32
  }
}

</mosaic_0001>

<bundles_post_ra>
// kernel: pinn_loss.1
= control target key start
LH: loop header
LB: loop body
LE: loop exit
PB: predicated region body
PF: predicated region fallthrough
CT: control target
= control target key end

     0   :  { %vm172_vm0 = vcmask 523264   ;;  %s582_s1 = inlined_call_operand.<no memory space> [shape: s32[1], index: 1, kind: input, shape index: {}, may-alias: {0,1}]   ;;  %s583_s0 = inlined_call_operand.<no memory space> [shape: s32[1], index: 0, kind: input, shape index: {}, may-alias: {0,1}]   ;;  %s584_s3 = inlined_call_operand.vmem [shape: bf16[128,64], index: 3, kind: input, shape index: {}]   ;;  %s585_s2 = inlined_call_operand.vmem [shape: bf16[128,64], index: 2, kind: input, shape index: {}]   ;;  %s586_s4 = inlined_call_operand.vmem [shape: f32[1,8,128], index: 4, kind: output, shape index: {}]  }
   0x1   :  { %s368_s17 = sshll.u32 %s582_s1, 4  ;;  %s366_s20 = sshll.u32 %s583_s0, 4 }
   0x2   :  { %p53_p0 = scmp.lt.s32.totalorder %s368_s17, 15  ;;  %p45_p1 = scmp.lt.s32.totalorder %s366_s20, 15 }
   0x4   :  { %s588_s17 = smov (!%p53_p0, %s368_s17), 15  ;;  %s590_s20 = smov (!%p45_p1, %s366_s20), 15 }
   0x5   :  { %s369_s21 = sshll.u32 %s588_s17, 2  ;;  %s367_s0 = sshll.u32 %s590_s20, 2 }
   0x6   :  { %s524_s24 = scalar_lea.vmem %s584_s3, %s369_s21  ;;  %s536_s25 = scalar_lea.vmem %s585_s2, %s367_s0 }
   0x7   :  { %v474_v0 = vld [vmem:[%s524_s24] sm:$0xff]   ;;  %v475_v1 = vld [vmem:[%s524_s24 + $0x8] sm:$0xff]   ;;  %v476_v3 = vld [vmem:[%s524_s24 + $0x10] sm:$0xff]  }
   0x8   :  { %458 = vmatprep.subr.msk.bf16.mxu0 %vm172_vm0, %v474_v0  ;;  %v198_v2 = vsel %vm172_vm0, %v474_v0, 0  ;;  %459 = vmatprep.subr.msk.bf16.mxu1 %vm172_vm0, %v474_v0  ;;  %v201_v4 = vsel %vm172_vm0, %v475_v1, 0  ;;  %v482_v5 = vld [vmem:[%s536_s25] sm:$0xff]   ;;  %v204_v7 = vsel %vm172_vm0, %v476_v3, 0  ;;  %v477_v8 = vld [vmem:[%s524_s24 + $0x18] sm:$0xff]   ;;  %v479_v12 = vld [vmem:[%s524_s24 + $0x28] sm:$0xff]  }
   0x9   :  { %411 = vmatpush3.bf16.xpose.msra.mxu0 %v198_v2  ;;  %450 = vmatpush3.bf16.xpose.msra.mxu1 %v198_v2  ;;  %v486_v6 = vld [vmem:[%s536_s25 + $0x20] sm:$0xff]   ;;  %v207_v9 = vsel %vm172_vm0, %v477_v8, 0  ;;  %v213_v13 = vsel %vm172_vm0, %v479_v12, 0  ;;  %v480_v14 = vld [vmem:[%s524_s24 + $0x30] sm:$0xff]   ;;  %v481_v16 = vld [vmem:[%s524_s24 + $0x38] sm:$0xff]  }
   0xa   :  { %460 = vmatprep.subr.msk.bf16.mxu0 %vm172_vm0, %v475_v1  ;;  %461 = vmatprep.subr.msk.bf16.mxu1 %vm172_vm0, %v475_v1  ;;  %v478_v10 = vld [vmem:[%s524_s24 + $0x20] sm:$0xff]   ;;  %v216_v15 = vsel %vm172_vm0, %v480_v14, 0  ;;  %v219_v17 = vsel %vm172_vm0, %v481_v16, 0  ;;  %v483_v18 = vld [vmem:[%s536_s25 + $0x8] sm:$0xff]   ;;  %v484_v20 = vld [vmem:[%s536_s25 + $0x10] sm:$0xff]  }
   0xb   :  { %426 = vmatprep.mubr.msk.bf16.mxu0 %vm172_vm0, %v482_v5  ;;  %434 = vmatprep.mubr.msk.bf16.mxu1 %vm172_vm0, %v486_v6  ;;  %v210_v11 = vsel %vm172_vm0, %v478_v10, 0  ;;  %v487_v19 = vld [vmem:[%s536_s25 + $0x28] sm:$0xff]   ;;  %v488_v21 = vld [vmem:[%s536_s25 + $0x30] sm:$0xff]   ;;  %v485_v22 = vld [vmem:[%s536_s25 + $0x18] sm:$0xff]  }
   0xc   :  { %v489_v23 = vld [vmem:[%s536_s25 + $0x38] sm:$0xff]  }
  0x11   :  { %413 = vmatpush3.bf16.xpose.msra.mxu0 %v201_v4  ;;  %451 = vmatpush3.bf16.xpose.msra.mxu1 %v201_v4 }
  0x12   :  { %462 = vmatprep.subr.msk.bf16.mxu0 %vm172_vm0, %v476_v3  ;;  %463 = vmatprep.subr.msk.bf16.mxu1 %vm172_vm0, %v476_v3 }
  0x19   :  { %415 = vmatpush3.bf16.xpose.msra.mxu0 %v204_v7  ;;  %452 = vmatpush3.bf16.xpose.msra.mxu1 %v204_v7 }
  0x1a   :  { %464 = vmatprep.subr.msk.bf16.mxu0 %vm172_vm0, %v477_v8  ;;  %465 = vmatprep.subr.msk.bf16.mxu1 %vm172_vm0, %v477_v8 }
  0x21   :  { %417 = vmatpush3.bf16.xpose.msra.mxu0 %v207_v9  ;;  %453 = vmatpush3.bf16.xpose.msra.mxu1 %v207_v9 }
  0x22   :  { %466 = vmatprep.subr.msk.bf16.mxu0 %vm172_vm0, %v478_v10  ;;  %467 = vmatprep.subr.msk.bf16.mxu1 %vm172_vm0, %v478_v10 }
  0x29   :  { %419 = vmatpush3.bf16.xpose.msra.mxu0 %v210_v11  ;;  %454 = vmatpush3.bf16.xpose.msra.mxu1 %v210_v11 }
  0x2a   :  { %468 = vmatprep.subr.msk.bf16.mxu0 %vm172_vm0, %v479_v12  ;;  %469 = vmatprep.subr.msk.bf16.mxu1 %vm172_vm0, %v479_v12 }
  0x31   :  { %421 = vmatpush3.bf16.xpose.msra.mxu0 %v213_v13  ;;  %455 = vmatpush3.bf16.xpose.msra.mxu1 %v213_v13 }
  0x32   :  { %470 = vmatprep.subr.msk.bf16.mxu0 %vm172_vm0, %v480_v14  ;;  %471 = vmatprep.subr.msk.bf16.mxu1 %vm172_vm0, %v480_v14 }
  0x39   :  { %423 = vmatpush3.bf16.xpose.msra.mxu0 %v216_v15  ;;  %456 = vmatpush3.bf16.xpose.msra.mxu1 %v216_v15 }
  0x3a   :  { %472 = vmatprep.subr.msk.bf16.mxu0 %vm172_vm0, %v481_v16  ;;  %473 = vmatprep.subr.msk.bf16.mxu1 %vm172_vm0, %v481_v16 }
  0x41   :  { %425 = vmatpush3.bf16.xpose.msra.mxu0 %v219_v17  ;;  %457 = vmatpush3.bf16.xpose.msra.mxu1 %v219_v17 }
  0x48   :  { %427 = vmatmul.mubr.msk.bf16.vlgmr.msra.gmra.mrb[0].mxu0 %vm172_vm0, %v483_v18  ;;  %435 = vmatmul.mubr.msk.bf16.vlgmr.msra.gmra.mrb[0].mxu1 %vm172_vm0, %v487_v19 }
  0x49   :  { %430 = vmatprep.mubr.msk.bf16.mxu0 %vm172_vm0, %v484_v20  ;;  %438 = vmatprep.mubr.msk.bf16.mxu1 %vm172_vm0, %v488_v21 }
  0x50   :  { %431 = vmatmul.mubr.msk.bf16.gmra.mrb[4].mxu0 %vm172_vm0, %v485_v22  ;;  %439 = vmatmul.mubr.msk.bf16.gmra.mrb[4].mxu1 %vm172_vm0, %v489_v23 }
 0x11b   :  { %v428_v24 = vpop.f32.mrb[0].mxu0  ;;  %v436_v25 = vpop.f32.mrb[0].mxu1 }
 0x11c   :  { %v255_v26 = vpop.f32.mrb[1].mxu0  ;;  %v287_v27 = vpop.f32.mrb[1].mxu1  ;;  %v320_v34 = vmul.f32 %v428_v24, %v428_v24  ;;  %v328_v58 = vmul.f32 %v436_v25, %v436_v25 }
 0x11d   :  { %v429_v28 = vpop.f32.mrb[2].mxu0  ;;  %v437_v29 = vpop.f32.mrb[2].mxu1  ;;  %v318_v32 = vmul.f32 %v255_v26, %v255_v26  ;;  %v326_v54 = vmul.f32 %v287_v27, %v287_v27 }
 0x11e   :  { %v258_v30 = vpop.f32.mrb[3].mxu0  ;;  %v290_v31 = vpop.f32.mrb[3].mxu1  ;;  %v321_v36 = vmul.f32 %v429_v28, %v429_v28  ;;  %v329_v60 = vmul.f32 %v437_v29, %v437_v29 }
 0x11f   :  { %v319_v33 = vmul.f32 %v258_v30, %v258_v30  ;;  %v327_v57 = vmul.f32 %v290_v31, %v290_v31 }
 0x121   :  { %v334_v35 = vadd.f32 %v319_v33, %v318_v32 }
 0x123   :  { %v335_v37 = vadd.f32 %v334_v35, %v320_v34  ;;  %v432_v38 = vpop.f32.mrb[4].mxu0  ;;  %v440_v39 = vpop.f32.mrb[4].mxu1 }
 0x124   :  { %v271_v40 = vpop.f32.mrb[5].mxu0  ;;  %v303_v41 = vpop.f32.mrb[5].mxu1  ;;  %v324_v50 = vmul.f32 %v432_v38, %v432_v38  ;;  %v332_v2 = vmul.f32 %v440_v39, %v440_v39 }
 0x125   :  { %v322_v42 = vmul.f32 %v271_v40, %v271_v40  ;;  %v336_v43 = vadd.f32 %v335_v37, %v321_v36  ;;  %v433_v44 = vpop.f32.mrb[6].mxu0  ;;  %v441_v45 = vpop.f32.mrb[6].mxu1  ;;  %v330_v62 = vmul.f32 %v303_v41, %v303_v41 }
 0x126   :  { %v274_v46 = vpop.f32.mrb[7].mxu0  ;;  %v306_v47 = vpop.f32.mrb[7].mxu1  ;;  %v325_v52 = vmul.f32 %v433_v44, %v433_v44  ;;  %v333_v4 = vmul.f32 %v441_v45, %v441_v45 }
 0x127   :  { %v337_v48 = vadd.f32 %v336_v43, %v322_v42  ;;  %v323_v49 = vmul.f32 %v274_v46, %v274_v46  ;;  %v331_v1 = vmul.f32 %v306_v47, %v306_v47 }
 0x129   :  { %v338_v51 = vadd.f32 %v337_v48, %v323_v49 }
 0x12b   :  { %v339_v53 = vadd.f32 %v338_v51, %v324_v50 }
 0x12d   :  { %v340_v55 = vadd.f32 %v339_v53, %v325_v52 }
 0x12f   :  { %v341_v56 = vadd.f32 %v340_v55, %v326_v54 }
 0x131   :  { %v342_v59 = vadd.f32 %v341_v56, %v327_v57 }
 0x133   :  { %v343_v61 = vadd.f32 %v342_v59, %v328_v58 }
 0x135   :  { %v344_v63 = vadd.f32 %v343_v61, %v329_v60 }
 0x137   :  { %v345_v0 = vadd.f32 %v344_v63, %v330_v62 }
 0x139   :  { %v346_v3 = vadd.f32 %v345_v0, %v331_v1 }
 0x13b   :  { %v347_v5 = vadd.f32 %v346_v3, %v332_v2 }
 0x13d   :  { %v348_v6 = vadd.f32 %v347_v5, %v333_v4 }
 0x13f   :  { %349 = vst [vmem:[%s586_s4] sm:$0xff] %v348_v6 }

</bundles_post_ra>
